<compile_context>
chip_gen: v6e
topology: v6e:2x2x1
jax: 0.10.0
libtpu: 0.0.40
codegen_flags: <defaults>
</compile_context>

<pallas_src>
import jax
import jax.numpy as jnp
from jax.experimental import pallas as pl
from jax.experimental.pallas import tpu as pltpu


def _affine_rows_kernel(x_ref, p_ref, o_ref):
    # x_ref/o_ref: (block_rows, lane_tile); p_ref: (block_rows, 2) f32.
    # Per-row scale/shift broadcast along lanes; pure VPU FMA in f32.
    x = x_ref[...].astype(jnp.float32)
    p = p_ref[...]
    g = p[:, 0:1]
    b = p[:, 1:2]
    o_ref[...] = (x * g + b).astype(o_ref.dtype)


def _affine_lanes_kernel(x_ref, p_ref, o_ref):
    # x_ref/o_ref: (block_rows, lane_tile); p_ref: (2, lane_tile) f32.
    # Per-lane scale/shift broadcast along sublanes; pure VPU FMA in f32.
    x = x_ref[...].astype(jnp.float32)
    p = p_ref[...]
    g = p[0:1, :]
    b = p[1:2, :]
    o_ref[...] = (x * g + b).astype(o_ref.dtype)


def _sublane_for(dtype):
    # Sublane packing granularity per element width (32b: 8, 16b: 16, 8b: 32).
    return {4: 8, 2: 16, 1: 32}.get(jnp.dtype(dtype).itemsize, 8)


def _choose_tiles(R2, L2, itemsize, sublane, target_block_bytes):
    """Pick (block_rows, lane_tile) so one x tile is <= target_block_bytes."""
    if L2 % 128 != 0:
        # Full-dim escape hatch: non-128-multiple lane extents must use the
        # full axis (only hit for small/ragged spatial extents).
        lane_tile = L2
    else:
        max_lane = max(128, target_block_bytes // (sublane * itemsize))
        lane_tile = min(L2, (max_lane // 128) * 128)
    rows_budget = max(1, target_block_bytes // max(1, lane_tile * itemsize))
    if rows_budget >= R2 or R2 <= sublane:
        block_rows = R2  # full row extent (also valid when R2 < sublane)
    else:
        block_rows = min(R2, max(sublane, (rows_budget // sublane) * sublane))
    return block_rows, lane_tile


def non_norm_batchnorm2d(x, gamma, beta, *, target_block_bytes=4 << 20):
    """x: (N, C, H, W); gamma, beta: (1, C, 1, 1). Returns x * gamma + beta."""
    N, C, H, W = x.shape
    assert gamma.shape == (1, C, 1, 1) and beta.shape == (1, C, 1, 1)

    out_dtype = jnp.result_type(x.dtype, gamma.dtype, beta.dtype)
    x_itemsize = jnp.dtype(x.dtype).itemsize
    sublane = _sublane_for(x.dtype)
    L = H * W

    if L % 128 == 0:
        # ---- Path A: (N*C, H*W) view, per-row packed (gamma, beta) ----------
        R2, L2 = N * C, L
        x2 = x.reshape(R2, L2)
        g_rows = jnp.broadcast_to(gamma.reshape(1, C), (N, C)).reshape(R2)
        b_rows = jnp.broadcast_to(beta.reshape(1, C), (N, C)).reshape(R2)
        params = jnp.stack([g_rows, b_rows], axis=1).astype(jnp.float32)  # (R2, 2)
        kernel = _affine_rows_kernel

        def param_spec(block_rows, lane_tile):
            # Indexed only by the row axis -> resident across the inner lane loop.
            return pl.BlockSpec((block_rows, 2), lambda i, j: (i, 0))
    else:
        # ---- Path B: (N, C*H*W) view, params vary along the lane axis -------
        R2, L2 = N, C * L
        x2 = x.reshape(R2, L2)
        g_flat = jnp.broadcast_to(gamma.reshape(C, 1), (C, L)).reshape(1, L2)
        b_flat = jnp.broadcast_to(beta.reshape(C, 1), (C, L)).reshape(1, L2)
        params = jnp.concatenate([g_flat, b_flat], axis=0).astype(jnp.float32)  # (2, L2)
        kernel = _affine_lanes_kernel

        def param_spec(block_rows, lane_tile):
            return pl.BlockSpec((2, lane_tile), lambda i, j: (0, j))

    block_rows, lane_tile = _choose_tiles(
        R2, L2, x_itemsize, sublane, target_block_bytes
    )
    grid = (pl.cdiv(R2, block_rows), pl.cdiv(L2, lane_tile))

    x_spec = pl.BlockSpec((block_rows, lane_tile), lambda i, j: (i, j))
    o_spec = pl.BlockSpec((block_rows, lane_tile), lambda i, j: (i, j))
    p_spec = param_spec(block_rows, lane_tile)

    total_elems = R2 * L2
    cost = pl.CostEstimate(
        flops=2 * total_elems,
        transcendentals=0,
        bytes_accessed=(
            total_elems * x_itemsize
            + total_elems * jnp.dtype(out_dtype).itemsize
            + params.size * 4
        ),
    )

    out2 = pl.pallas_call(
        kernel,
        out_shape=jax.ShapeDtypeStruct((R2, L2), out_dtype),
        grid=grid,
        in_specs=[x_spec, p_spec],
        out_specs=o_spec,
        compiler_params=pltpu.CompilerParams(
            dimension_semantics=("parallel", "parallel"),
            vmem_limit_bytes=48 << 20,
        ),
        cost_estimate=cost,
    )(x2, params)

    return out2.reshape(N, C, H, W)


if __name__ == "__main__":
    # Primary check: module-default-like params (ones/zeros) perturbed
    # deterministically so the affine is non-trivial. Exercises Path A.
    N, C, H, W = 2, 4, 16, 16
    key = jax.random.PRNGKey(0)
    kx, kg, kb = jax.random.split(key, 3)

    x = jax.random.normal(kx, (N, C, H, W), dtype=jnp.float32)
    gamma = jnp.ones((1, C, 1, 1), jnp.float32) + 0.1 * jax.random.normal(
        kg, (1, C, 1, 1), dtype=jnp.float32
    )
    beta = jnp.zeros((1, C, 1, 1), jnp.float32) + 0.1 * jax.random.normal(
        kb, (1, C, 1, 1), dtype=jnp.float32
    )

    out = jax.block_until_ready(non_norm_batchnorm2d(x, gamma, beta))
    ref = x * gamma + beta
    assert out.shape == ref.shape and out.dtype == ref.dtype
    assert jnp.allclose(out, ref, atol=1e-6, rtol=1e-6)

    # Secondary check: small, non-128-multiple spatial extent -> Path B.
    N2, C2, H2, W2 = 2, 3, 5, 7
    kx2, kg2, kb2 = jax.random.split(jax.random.PRNGKey(1), 3)
    xb = jax.random.normal(kx2, (N2, C2, H2, W2), dtype=jnp.float32)
    gammab = jnp.ones((1, C2, 1, 1), jnp.float32) + 0.1 * jax.random.normal(
        kg2, (1, C2, 1, 1), dtype=jnp.float32
    )
    betab = jnp.zeros((1, C2, 1, 1), jnp.float32) + 0.1 * jax.random.normal(
        kb2, (1, C2, 1, 1), dtype=jnp.float32
    )
    outb = jax.block_until_ready(non_norm_batchnorm2d(xb, gammab, betab))
    refb = xb * gammab + betab
    assert jnp.allclose(outb, refb, atol=1e-6, rtol=1e-6)

    print("KERNEL_OK")
</pallas_src>

<mosaic_0001>
module attributes {stable_mosaic.version = 11 : i64} {
  func.func @_affine_rows_kernel(%arg0: i32, %arg1: i32, %arg2: memref<8x256xf32, #tpu.memory_space<vmem>>, %arg3: memref<8x2xf32, #tpu.memory_space<vmem>>, %arg4: memref<8x256xf32, #tpu.memory_space<vmem>>) attributes {dimension_semantics = [#tpu.dimension_semantics<parallel>, #tpu.dimension_semantics<parallel>], iteration_bounds = array<i64: 1, 1>, scalar_prefetch = 0 : i64, scratch_operands = 0 : i64, tpu.core_type = #tpu.core_type<tc>, window_params = [{transform_indices = @transform_0, window_bounds = array<i64: 8, 256>}, {transform_indices = @transform_1, window_bounds = array<i64: 8, 2>}, {transform_indices = @transform_2, window_bounds = array<i64: 8, 256>}]} {
    %c0 = arith.constant 0 : index
    %c0_0 = arith.constant 0 : index
    %0 = vector.load %arg2[%c0, %c0_0] : memref<8x256xf32, #tpu.memory_space<vmem>>, vector<8x256xf32>
    %c0_1 = arith.constant 0 : index
    %c0_2 = arith.constant 0 : index
    %1 = vector.load %arg3[%c0_1, %c0_2] : memref<8x2xf32, #tpu.memory_space<vmem>>, vector<8x2xf32>
    %2 = vector.extract_strided_slice %1 {offsets = [0, 0], sizes = [8, 1], strides = [1, 1]} : vector<8x2xf32> to vector<8x1xf32>
    %3 = vector.extract_strided_slice %1 {offsets = [0, 1], sizes = [8, 1], strides = [1, 1]} : vector<8x2xf32> to vector<8x1xf32>
    %4 = vector.broadcast %2 : vector<8x1xf32> to vector<8x256xf32>
    %5 = arith.mulf %0, %4 : vector<8x256xf32>
    %6 = vector.broadcast %3 : vector<8x1xf32> to vector<8x256xf32>
    %7 = arith.addf %5, %6 : vector<8x256xf32>
    %c0_3 = arith.constant 0 : index
    %c0_4 = arith.constant 0 : index
    %8 = vector.load %arg4[%c0_3, %c0_4] : memref<8x256xf32, #tpu.memory_space<vmem>>, vector<8x256xf32>
    tpu.vector_store %arg4[%c0_3, %c0_4], %7 {strides = array<i32>} : memref<8x256xf32, #tpu.memory_space<vmem>>, vector<8x256xf32>,
    return
  }
  func.func @transform_0(%arg0: i32, %arg1: i32) -> (i32, i32) {
    %c0_i32 = arith.constant 0 : i32
    return %arg0, %arg1 : i32, i32
  }
  func.func @transform_1(%arg0: i32, %arg1: i32) -> (i32, i32) {
    %c0_i32 = arith.constant 0 : i32
    %c0_i32_0 = arith.constant 0 : i32
    return %arg0, %c0_i32 : i32, i32
  }
  func.func @transform_2(%arg0: i32, %arg1: i32) -> (i32, i32) {
    %c0_i32 = arith.constant 0 : i32
    return %arg0, %arg1 : i32, i32
  }
}

</mosaic_0001>

<bundles_post_ra>
// kernel: tpu_custom_call.1
= control target key start
LH: loop header
LB: loop body
LE: loop exit
PB: predicated region body
PF: predicated region fallthrough
CT: control target
= control target key end

     0   :  { %7 = vsyncpa [#allocation3], 0  ;;  %s135_s0 = inlined_call_operand.hbm [shape: f32[8,256], index: 0, kind: input, shape index: {}]   ;;  %s136_s1 = inlined_call_operand.vmem [shape: f32[8,2], index: 1, kind: input, shape index: {}]   ;;  %s137_s2 = inlined_call_operand.hbm [shape: f32[8,256], index: 2, kind: output, shape index: {}]  }
   0x1   :  { %8 = vsyncpa [#allocation4], 0  ;;  %s107_s9 = smov [#allocation2]  }
   0x2   :  { %s15_s10 = sshll.u32 %s107_s9, 4  ;;  %s16_s10 = int_to_ptr.vmem [resolvable:$true] %s15_s10 }
   0x3   :  { %s71_s11 = scalar_lea.vmem %s16_s10, 256  ;;  %p76_p1 = scmp.lt.s32.totalorder %s16_s10, %s16_s10 }
   0x4   :  { %p72_p0 = scmp.ne.s32.totalorder %s16_s10, %s71_s11  ;;  %p77_p2 = scmp.lt.s32.totalorder %s71_s11, %s71_s11 }
   0x6   :  { %p78_p3 = por %p77_p2, %p76_p1 }
   0x8   :  { %p79_p4 = pnand %p78_p3, %p72_p0 }
   0xa   :  { %82 = shalt.err (!%p79_p4)
}
   0xb   :  { %18 = dma.hbm_to_vmem [thread:$0]  %s135_s0, 256, %s16_s10, [#allocation3]  }
   0xc   :  { %103 = dma.done.wait [#allocation3], 256  }
   0xd   :  { %104 = vsyncadd [#allocation3], 4294967040  ;;  %v108_v0 = vmov 0   ;;  %v26_v1 = vld [vmem:[%s136_s1] sm:$0xff]  ;;  %v109_v2 = vmov 1   ;;  %v25_v5 = vld [vmem:[#allocation2 + $0x8] sm:$0xff] }
   0xe   :  { %61 = vset.pattern.permute.xlu0 %v108_v0  ;;  %v24_v4 = vld [vmem:[#allocation2] sm:$0xff]  ;;  %s110_s16 = smov [#allocation5]  }
   0xf   :  { %29 = vperm.xlu0 %61, %v26_v1   ;;  %s48_s17 = sshll.u32 %s110_s16, 4  ;;  %s49_s17 = int_to_ptr.vmem [resolvable:$true] %s48_s17 }
  0x10   :  { %s83_s0 = scalar_lea.vmem %s49_s17, 256  ;;  %p88_p6 = scmp.lt.s32.totalorder %s49_s17, %s49_s17 }
  0x11   :  { %p84_p5 = scmp.ne.s32.totalorder %s49_s17, %s83_s0  ;;  %p89_p7 = scmp.lt.s32.totalorder %s83_s0, %s83_s0 }
  0x13   :  { %62 = vset.pattern.permute.xlu0 %v109_v2  ;;  %p90_p8 = por %p89_p7, %p88_p6 }
  0x14   :  { %35 = vperm.xlu0 %62, %v26_v1  }
  0x15   :  { %p91_p9 = pnand %p90_p8, %p84_p5 }
  0x8a   :  { %v30_v3 = vpop.permute.xlu0 %29 }
  0x8b   :  { %v32_v6 = vmul.f32 %v30_v3, %v24_v4  ;;  %v33_v7 = vmul.f32 %v30_v3, %v25_v5 }
  0x8f   :  { %v36_v8 = vpop.permute.xlu0 %35 }
  0x90   :  { %v38_v9 = vadd.f32 %v36_v8, %v32_v6  ;;  %v39_v10 = vadd.f32 %v36_v8, %v33_v7 }
  0x92   :  { %40 = vst [vmem:[#allocation5] sm:$0xff] %v38_v9  ;;  %41 = vst [vmem:[#allocation5 + $0x8] sm:$0xff] %v39_v10 }
  0x93   :  { %94 = shalt.err (!%p91_p9)
}
  0x94   :  { %51 = dma.vmem_to_hbm [thread:$0]  %s49_s17, 256, %s137_s2, [#allocation4]  }
  0x95   :  { %105 = dma.done.wait [#allocation4], 256  }
  0x96   :  { %106 = vsyncadd [#allocation4], 4294967040 }
  0x97   :  { %55 = vsyncpa [#allocation3], 1 }
  0x98   :  { %56 = vsyncpa [#allocation4], 1 }

</bundles_post_ra>
